<compile_context>
chip_gen: v7x
topology: tpu7x:2x2x1
jax: 0.10.0
libtpu: 0.0.40
codegen_flags: <defaults>
</compile_context>

<pallas_src>
import functools

import jax
import jax.numpy as jnp
from jax.experimental import pallas as pl
from jax.experimental.pallas import tpu as pltpu


def _sublane_multiple(dtype):
    # native sublane packing: 8 rows/vreg at 32-bit, 16 at 16-bit, 32 at 8-bit
    return max(8, 8 * (4 // max(1, jnp.dtype(dtype).itemsize)))


def _fused_orthohash_kernel(logits_ref, labels_ref, margin_ref, *rest,
                            s, ce_w, quan_w, quan_type, batch):
    """Fused elastic cos-margin CE + quantization; one partial sum per batch tile."""
    with_quan = quan_w != 0.0
    if with_quan:
        code_ref, out_ref = rest
    else:
        (out_ref,) = rest

    i = pl.program_id(0)

    logits = logits_ref[...].astype(jnp.float32)               # [TB, C]
    labels = labels_ref[...]                                    # [TB, 1] int32
    margin = margin_ref[...].astype(jnp.float32)                # [TB, 1]
    tb, nclass = logits.shape

    # valid-row mask: ragged last block -> out-of-bounds rows hold garbage
    row_ids = i * tb + jax.lax.broadcasted_iota(jnp.int32, (tb, 1), 0)
    valid = row_ids < batch                                     # [TB, 1] bool

    # mask VALUES (not just the reduced sums) so garbage can't reach exp/log as NaN/Inf
    logits = jnp.where(valid, logits, 0.0)
    labels = jnp.where(valid, labels, 0)
    margin = jnp.where(valid, margin, 0.0)
    valid_f = valid.astype(jnp.float32)

    # label predicate built in-kernel (no dense f32 one-hot materialized)
    col_ids = jax.lax.broadcasted_iota(jnp.int32, (tb, nclass), 1)
    is_label = col_ids == labels                                # [TB, C] bool

    # margin_logits = s * (logits - scatter_(1, labels, margin))  (elastic per-row margin)
    margin_logits = s * logits - jnp.where(is_label, s * margin, 0.0)

    # F.cross_entropy(margin_logits, labels): stable LSE, summed over valid rows
    row_max = jnp.max(margin_logits, axis=1, keepdims=True)
    lse = row_max + jnp.log(
        jnp.sum(jnp.exp(margin_logits - row_max), axis=1, keepdims=True))
    tgt = jnp.sum(jnp.where(is_label, margin_logits, 0.0), axis=1, keepdims=True)
    ce_rows = (lse - tgt) * valid_f                             # [TB, 1]

    partial = (ce_w / batch) * jnp.sum(ce_rows, keepdims=True)  # (1, 1)

    if with_quan:
        code = code_ref[...].astype(jnp.float32)                # [TB, K]
        code = jnp.where(valid, code, 0.0)
        nbits = code.shape[1]
        ct = jnp.clip(code, -0.5, 0.5) * 2.0                    # hardtanh(-.5,.5) * 2
        if quan_type == 'cs':
            eps = 1e-8                                          # torch cosine_similarity eps
            num = jnp.sum(jnp.abs(ct), axis=1, keepdims=True)   # ct*sign(ct) == |ct|
            na = jnp.maximum(
                jnp.sqrt(jnp.sum(ct * ct, axis=1, keepdims=True)), eps)
            nb = jnp.maximum(
                jnp.sqrt(jnp.sum((ct != 0.0).astype(jnp.float32),
                                 axis=1, keepdims=True)), eps)  # sign^2 == (ct != 0)
            cos = num * pl.reciprocal(na * nb, approx=True)
            quan_rows = (1.0 - cos) * valid_f
            quan_norm = float(batch)
        else:
            diff = ct - jnp.sign(ct)
            q = jnp.abs(diff) if quan_type == 'l1' else diff * diff
            quan_rows = jnp.sum(q, axis=1, keepdims=True) * valid_f
            quan_norm = float(batch * nbits)
        partial = partial + (quan_w / quan_norm) * jnp.sum(quan_rows, keepdims=True)

    out_ref[...] = partial.reshape(1, 1, 1)


class OrthoHashLoss:
    """JAX/Pallas port of OrthoHashLoss forward (default config path)."""

    def __init__(self, ce=1, s=8, m=0.2, m_type='cos', multiclass=False,
                 quan=0, quan_type='cs', multiclass_loss='label_smoothing',
                 device=None, **kwargs):
        assert multiclass_loss in ['bce', 'imbalance', 'label_smoothing']
        self.ce = ce
        self.s = s
        self.m = m
        self.m_type = m_type
        self.multiclass = multiclass
        self.quan = quan
        self.quan_type = quan_type
        self.multiclass_loss = multiclass_loss

    def __call__(self, logits, code_logits, labels, key, onehot=True,
                 block_rows=None):
        assert not self.multiclass
        assert self.m_type == 'cos'

        if onehot:
            labels_idx = jnp.argmax(labels, axis=1)
        else:
            labels_idx = labels
        B, C = logits.shape
        labels_idx = labels_idx.astype(jnp.int32).reshape(B, 1)

        with_quan = self.quan != 0
        K = code_logits.shape[1] if with_quan else 0
        if with_quan and self.quan_type not in ('cs', 'l1', 'l2'):
            raise NotImplementedError(self.quan_type)

        # compute_margin_logits_elastic: per-sample margin ~ Normal(mean=m, std=0.125)
        margin = self.m + 0.125 * jax.random.normal(key, (B, 1), dtype=jnp.float32)

        # --- batch tiling: biggest sublane-aligned tile within a per-generation budget
        sub = _sublane_multiple(logits.dtype)
        if with_quan:
            sub = max(sub, _sublane_multiple(code_logits.dtype))
        row_bytes = C * jnp.dtype(logits.dtype).itemsize + 8          # + labels + margin
        if with_quan:
            row_bytes += K * jnp.dtype(code_logits.dtype).itemsize
        try:
            vmem_cap = int(pltpu.get_tpu_info().vmem_capacity_bytes)
        except Exception:
            vmem_cap = 64 << 20                                       # conservative (v7x)
        budget = vmem_cap // 8                                        # per buffer-set
        if block_rows is None:
            cap = (budget // max(row_bytes, 1)) // sub * sub
            tb = min(4096, max(sub, cap))
        else:
            tb = max(sub, (int(block_rows) // sub) * sub)
        if tb >= B:
            tb = B                                                    # full-extent block
        num_tiles = (B + tb - 1) // tb

        block_bytes = tb * row_bytes
        vmem_limit = int(min((vmem_cap * 3) // 5,
                             max(32 << 20, 2 * block_bytes + (4 << 20))))

        operands = [logits, labels_idx, margin]
        in_specs = [
            pl.BlockSpec((tb, C), lambda i: (i, 0)),
            pl.BlockSpec((tb, 1), lambda i: (i, 0)),
            pl.BlockSpec((tb, 1), lambda i: (i, 0)),
        ]
        if with_quan:
            operands.append(code_logits)
            in_specs.append(pl.BlockSpec((tb, K), lambda i: (i, 0)))

        kernel = functools.partial(
            _fused_orthohash_kernel,
            s=float(self.s), ce_w=float(self.ce), quan_w=float(self.quan),
            quan_type=self.quan_type, batch=B)

        cost = pl.CostEstimate(
            flops=int(5 * B * C + (6 * B * K if with_quan else 0)),
            transcendentals=int(B * C),
            bytes_accessed=int(B * row_bytes + num_tiles * 4))

        partials = pl.pallas_call(
            kernel,
            grid=(num_tiles,),
            in_specs=in_specs,
            out_specs=pl.BlockSpec((1, 1, 1), lambda i: (i, 0, 0)),
            out_shape=jax.ShapeDtypeStruct((num_tiles, 1, 1), jnp.float32),
            compiler_params=pltpu.CompilerParams(
                dimension_semantics=("parallel",),
                vmem_limit_bytes=vmem_limit),
            cost_estimate=cost,
        )(*operands)
        return jnp.sum(partials)


if __name__ == "__main__":
    key = jax.random.PRNGKey(0)
    k_logits, k_code, k_lbl, k_margin = jax.random.split(key, 4)

    B, C, K = 10, 16, 32  # batch (not a sublane multiple -> exercises value masking)
    logits = jax.random.normal(k_logits, (B, C), dtype=jnp.float32)
    code_logits = jax.random.normal(k_code, (B, K), dtype=jnp.float32)
    labels_idx = jax.random.randint(k_lbl, (B,), 0, C)
    labels_onehot = jax.nn.one_hot(labels_idx, C, dtype=jnp.float32)

    # Default config (quan=0): elastic cos-margin cross-entropy only (one-hot path).
    loss = OrthoHashLoss()(logits, code_logits, labels_onehot, k_margin, onehot=True)
    jax.block_until_ready(loss)

    # Fused quantization (cosine-similarity) path, integer-label hot path.
    loss_q = OrthoHashLoss(quan=0.5, quan_type='cs')(
        logits, code_logits, labels_idx, k_margin, onehot=False)
    jax.block_until_ready(loss_q)

    # Multi-tile + ragged last block (forced 8-row tile -> grid=2, last block ragged).
    loss_mt = OrthoHashLoss(quan=0.5, quan_type='l2')(
        logits, code_logits, labels_idx, k_margin, onehot=False, block_rows=8)
    jax.block_until_ready(loss_mt)

    # --- pure-JAX reference check ---------------------------------------------
    margin_ref = 0.2 + 0.125 * jax.random.normal(k_margin, (B, 1), dtype=jnp.float32)
    ml = 8.0 * (logits - labels_onehot * margin_ref)
    lse = jax.scipy.special.logsumexp(ml, axis=1)
    ce_ref = jnp.mean(lse - jnp.sum(labels_onehot * ml, axis=1))
    ct = jnp.clip(code_logits, -0.5, 0.5) * 2.0
    sgn = jnp.sign(ct)
    cos = jnp.sum(ct * sgn, axis=1) / (
        jnp.maximum(jnp.linalg.norm(ct, axis=1), 1e-8)
        * jnp.maximum(jnp.linalg.norm(sgn, axis=1), 1e-8))
    ref_q = ce_ref + 0.5 * jnp.mean(1.0 - cos)
    ref_l2 = ce_ref + 0.5 * jnp.mean((ct - sgn) ** 2)

    assert jnp.allclose(loss, ce_ref, rtol=5e-3, atol=5e-3), (loss, ce_ref)
    assert jnp.allclose(loss_q, ref_q, rtol=5e-3, atol=5e-3), (loss_q, ref_q)
    assert jnp.allclose(loss_mt, ref_l2, rtol=5e-3, atol=5e-3), (loss_mt, ref_l2)
    assert jnp.isfinite(loss) and jnp.isfinite(loss_q) and jnp.isfinite(loss_mt)
    print("KERNEL_OK")
</pallas_src>

<mosaic_0001>
module attributes {stable_mosaic.version = 11 : i64} {
  func.func @_fused_orthohash_kernel(%arg0: i32, %arg1: memref<10x16xf32, #tpu.memory_space<vmem>>, %arg2: memref<10x1xi32, #tpu.memory_space<vmem>>, %arg3: memref<10x1xf32, #tpu.memory_space<vmem>>, %arg4: memref<1x1x1xf32, #tpu.memory_space<vmem>>) attributes {dimension_semantics = [#tpu.dimension_semantics<parallel>], iteration_bounds = array<i64: 1>, scalar_prefetch = 0 : i64, scratch_operands = 0 : i64, tpu.core_type = #tpu.core_type<tc>, window_params = [{transform_indices = @transform_0, window_bounds = array<i64: 10, 16>}, {transform_indices = @transform_1, window_bounds = array<i64: 10, 1>}, {transform_indices = @transform_2, window_bounds = array<i64: 10, 1>}, {transform_indices = @transform_3, window_bounds = array<i64: 1, 1, 1>}]} {
    %c0 = arith.constant 0 : index
    %c0_0 = arith.constant 0 : index
    %0 = vector.load %arg1[%c0, %c0_0] : memref<10x16xf32, #tpu.memory_space<vmem>>, vector<10x16xf32>
    %c0_1 = arith.constant 0 : index
    %c0_2 = arith.constant 0 : index
    %1 = vector.load %arg2[%c0_1, %c0_2] : memref<10x1xi32, #tpu.memory_space<vmem>>, vector<10x1xi32>
    %c0_3 = arith.constant 0 : index
    %c0_4 = arith.constant 0 : index
    %2 = vector.load %arg3[%c0_3, %c0_4] : memref<10x1xf32, #tpu.memory_space<vmem>>, vector<10x1xf32>
    %c10_i32 = arith.constant 10 : i32
    %3 = arith.muli %arg0, %c10_i32 : i32
    %4 = tpu.iota {dimensions = array<i32: 0>} : vector<10x1xi32>
    %5 = vector.broadcast %3 : i32 to vector<10x1xi32>
    %6 = arith.addi %5, %4 : vector<10x1xi32>
    %c10_i32_5 = arith.constant 10 : i32
    %7 = vector.broadcast %c10_i32_5 : i32 to vector<10x1xi32>
    %8 = arith.cmpi slt, %6, %7 : vector<10x1xi32>
    %cst = arith.constant 0.000000e+00 : f32
    %9 = vector.shape_cast %8 : vector<10x1xi1> to vector<10x1xi1>
    %10 = vector.broadcast %9 : vector<10x1xi1> to vector<10x16xi1>
    %11 = vector.broadcast %cst : f32 to vector<10x16xf32>
    %12 = arith.select %10, %0, %11 : vector<10x16xi1>, vector<10x16xf32>
    %c0_i32 = arith.constant 0 : i32
    %13 = vector.broadcast %c0_i32 : i32 to vector<10x1xi32>
    %14 = arith.select %8, %1, %13 : vector<10x1xi1>, vector<10x1xi32>
    %cst_6 = arith.constant 0.000000e+00 : f32
    %15 = vector.broadcast %cst_6 : f32 to vector<10x1xf32>
    %16 = arith.select %8, %2, %15 : vector<10x1xi1>, vector<10x1xf32>
    %17 = arith.extui %8 : vector<10x1xi1> to vector<10x1xi32>
    %18 = arith.sitofp %17 : vector<10x1xi32> to vector<10x1xf32>
    %19 = tpu.iota {dimensions = array<i32: 1>} : vector<10x16xi32>
    %20 = vector.broadcast %14 : vector<10x1xi32> to vector<10x16xi32>
    %21 = arith.cmpi eq, %19, %20 : vector<10x16xi32>
    %cst_7 = arith.constant 8.000000e+00 : f32
    %22 = vector.broadcast %cst_7 : f32 to vector<10x16xf32>
    %23 = arith.mulf %22, %12 : vector<10x16xf32>
    %cst_8 = arith.constant 8.000000e+00 : f32
    %24 = vector.broadcast %cst_8 : f32 to vector<10x1xf32>
    %25 = arith.mulf %24, %16 : vector<10x1xf32>
    %cst_9 = arith.constant 0.000000e+00 : f32
    %26 = vector.shape_cast %25 : vector<10x1xf32> to vector<10x1xf32>
    %27 = vector.broadcast %26 : vector<10x1xf32> to vector<10x16xf32>
    %28 = vector.broadcast %cst_9 : f32 to vector<10x16xf32>
    %29 = arith.select %21, %27, %28 : vector<10x16xi1>, vector<10x16xf32>
    %30 = arith.subf %23, %29 : vector<10x16xf32>
    %cst_10 = arith.constant dense<0xFF800000> : vector<10xf32>
    %31 = vector.multi_reduction <maximumf>, %30, %cst_10 [1] : vector<10x16xf32> to vector<10xf32>
    %32 = vector.shape_cast %31 : vector<10xf32> to vector<10x1xf32>
    %33 = vector.broadcast %32 : vector<10x1xf32> to vector<10x16xf32>
    %34 = arith.subf %30, %33 : vector<10x16xf32>
    %35 = math.exp %34 : vector<10x16xf32>
    %cst_11 = arith.constant dense<0.000000e+00> : vector<10xf32>
    %36 = vector.multi_reduction <add>, %35, %cst_11 [1] : vector<10x16xf32> to vector<10xf32>
    %37 = vector.shape_cast %36 : vector<10xf32> to vector<10x1xf32>
    %38 = math.log %37 : vector<10x1xf32>
    %39 = arith.addf %32, %38 : vector<10x1xf32>
    %cst_12 = arith.constant 0.000000e+00 : f32
    %40 = vector.broadcast %cst_12 : f32 to vector<10x16xf32>
    %41 = arith.select %21, %30, %40 : vector<10x16xi1>, vector<10x16xf32>
    %cst_13 = arith.constant dense<0.000000e+00> : vector<10xf32>
    %42 = vector.multi_reduction <add>, %41, %cst_13 [1] : vector<10x16xf32> to vector<10xf32>
    %43 = vector.shape_cast %42 : vector<10xf32> to vector<10x1xf32>
    %44 = arith.subf %39, %43 : vector<10x1xf32>
    %45 = arith.mulf %44, %18 : vector<10x1xf32>
    %46 = vector.shape_cast %45 : vector<10x1xf32> to vector<1x10x1xf32>
    %cst_14 = arith.constant dense<0.000000e+00> : vector<1xf32>
    %47 = vector.multi_reduction <add>, %46, %cst_14 [1, 2] : vector<1x10x1xf32> to vector<1xf32>
    %48 = vector.shape_cast %47 : vector<1xf32> to vector<1x1x1xf32>
    %49 = vector.extract %48[0, 0, 0] : f32 from vector<1x1x1xf32>
    %50 = vector.broadcast %49 : f32 to vector<1x1xf32>
    %cst_15 = arith.constant 1.000000e-01 : f32
    %51 = vector.broadcast %cst_15 : f32 to vector<1x1xf32>
    %52 = arith.mulf %51, %50 : vector<1x1xf32>
    %53 = vector.shape_cast %52 : vector<1x1xf32> to vector<1x1x1xf32>
    %c0_16 = arith.constant 0 : index
    %c0_17 = arith.constant 0 : index
    %c0_18 = arith.constant 0 : index
    %54 = vector.load %arg4[%c0_16, %c0_17, %c0_18] : memref<1x1x1xf32, #tpu.memory_space<vmem>>, vector<1x1x1xf32>
    tpu.vector_store %arg4[%c0_16, %c0_17, %c0_18], %53 {strides = array<i32>} : memref<1x1x1xf32, #tpu.memory_space<vmem>>, vector<1x1x1xf32>,
    return
  }
  func.func @transform_0(%arg0: i32) -> (i32, i32) {
    %c0_i32 = arith.constant 0 : i32
    %c0_i32_0 = arith.constant 0 : i32
    return %arg0, %c0_i32 : i32, i32
  }
  func.func @transform_1(%arg0: i32) -> (i32, i32) {
    %c0_i32 = arith.constant 0 : i32
    %c0_i32_0 = arith.constant 0 : i32
    return %arg0, %c0_i32 : i32, i32
  }
  func.func @transform_2(%arg0: i32) -> (i32, i32) {
    %c0_i32 = arith.constant 0 : i32
    %c0_i32_0 = arith.constant 0 : i32
    return %arg0, %c0_i32 : i32, i32
  }
  func.func @transform_3(%arg0: i32) -> (i32, i32, i32) {
    %c0_i32 = arith.constant 0 : i32
    %c0_i32_0 = arith.constant 0 : i32
    %c0_i32_1 = arith.constant 0 : i32
    return %arg0, %c0_i32, %c0_i32_0 : i32, i32, i32
  }
}

</mosaic_0001>

<bundles_post_ra>
// kernel: tpu_custom_call.1
= control target key start
LH: loop header
LB: loop body
LE: loop exit
PB: predicated region body
PF: predicated region fallthrough
CT: control target
= control target key end

     0   :  { %v22_v2 = vlaneseq  ;;  %v180_v3 = vmov 0   ;;  %s245_s0 = inlined_call_operand.vmem [shape: f32[10,16], index: 0, kind: input, shape index: {}]   ;;  %s246_s1 = inlined_call_operand.vmem [shape: s32[10,1], index: 1, kind: input, shape index: {}]   ;;  %s247_s2 = inlined_call_operand.vmem [shape: f32[10,1], index: 2, kind: input, shape index: {}]   ;;  %s248_s3 = inlined_call_operand.hbm [shape: f32[1,1,1], index: 3, kind: output, shape index: {}]  }
   0x1   :  { %v17_v0 = vld [vmem:[%s246_s1] sm:$0xff]  ;;  %147 = vset.pattern.permute.xlu1 %v180_v3  ;;  %146 = vset.pattern.permute.xlu0 %v180_v3 }
   0x2   :  { %v19_v1 = vld [vmem:[%s247_s2] sm:$0xff] }
   0x3   :  { %8 = vsyncpa [#allocation3], 0  ;;  %45 = vperm.xlu1 %147, %v17_v0   ;;  %v54_v4 = vmul.f32 8.0, %v19_v1  ;;  %v23_v5 = vshrl.u32 %v22_v2, 7  ;;  %v18_v6 = vld [vmem:[%s246_s1 + $0x8] sm:$0x3] }
   0x4   :  { %v20_v8 = vld [vmem:[%s247_s2 + $0x8] sm:$0x3]  ;;  %v43_v12 = vand.u32 127, %v22_v2  ;;  %v15_v13 = vld [vmem:[%s245_s0] sm:$0xff]  ;;  %vm70_vm2 = vcmask 130048   ;;  %vm74_vm4 = vcmask 123904  }
   0x5   :  { %v24_v7 = vadd.s32 8, %v23_v5  ;;  %v52_v15 = vmul.f32 8.0, %v15_v13  ;;  %v16_v16 = vld [vmem:[%s245_s0 + $0x8] sm:$0x3]  ;;  %v181_v49 = vmov 0.0   ;;  %vm108_vm5 = vcmask 7168  }
   0x6   :  { %vm110_vm6 = vcmask 1024   ;;  %s182_s0 = smov [#allocation2]   ;;  %vm124_vm7 = vcmask 0  }
   0x7   :  { %58 = vperm.xlu1 %147, %v54_v4   ;;  %vm29_vm0 = vcmp.lt.s32.totalorder %v24_v7, 10  ;;  %s132_s2 = sshll.u32 %s182_s0, 4  ;;  %s133_s2 = int_to_ptr.vmem [resolvable:$true] %s132_s2 }
   0x8   :  { %v37_v9 = vsel %vm29_vm0, %v18_v6, 0  ;;  %v39_v10 = vsel %vm29_vm0, %v20_v8, 0.0  ;;  %v35_v19 = vsel %vm29_vm0, %v16_v16, 0.0  ;;  %v140_v50 = vsel %vm29_vm0, 1.0, %v181_v49  ;;  %s156_s24 = scalar_lea.vmem %s133_s2, 16  ;;  %s160_s25 = scalar_lea.vmem %s133_s2, 32 }
   0x9   :  { %48 = vperm.xlu0 %146, %v37_v9   ;;  %v55_v11 = vmul.f32 8.0, %v39_v10  ;;  %v53_v23 = vmul.f32 8.0, %v35_v19  ;;  %p157_p0 = scmp.ne.s32.totalorder %s133_s2, %s156_s24  ;;  %p161_p1 = scmp.lt.s32.totalorder %s133_s2, %s133_s2 }
   0xa   :  { %p162_p2 = scmp.lt.s32.totalorder %s160_s25, %s156_s24 }
   0xc   :  { %p163_p3 = por %p162_p2, %p161_p1 }
   0xd   :  { %63 = vperm.xlu0 %146, %v55_v11  }
   0xe   :  { %p164_p4 = pnand %p163_p3, %p157_p0 }
  0x82   :  { %v46_v14 = vpop.permute.xlu1 %45 }
  0x83   :  { %vm50_vm1 = vcmp.eq.s32.totalorder %v43_v12, %v46_v14 }
  0x86   :  { %v59_v17 = vpop.permute.xlu1 %58 }
  0x87   :  { %v66_v18 = vsel %vm50_vm1, %v59_v17, 0.0 }
  0x88   :  { %v68_v20 = vsub.f32 %v52_v15, %v66_v18  ;;  %v49_v21 = vpop.permute.xlu0 %48 }
  0x89   :  { %vm51_vm3 = vcmp.eq.s32.totalorder %v43_v12, %v49_v21 }
  0x8a   :  { %v71_v22 = vsel %vm70_vm2, %v68_v20, -inf  ;;  %v96_v40 = vsel %vm50_vm1, %v68_v20, 0.0 }
  0x8b   :  { %72 = vmax.xlane.f32.xlu1 %v71_v22  ;;  %v98_v41 = vsel %vm70_vm2, %v96_v40, 0.0 }
  0x8c   :  { %v64_v24 = vpop.permute.xlu0 %63 }
  0x8d   :  { %v67_v25 = vsel %vm51_vm3, %v64_v24, 0.0 }
  0x8e   :  { %v69_v26 = vsub.f32 %v53_v23, %v67_v25 }
  0x90   :  { %v75_v27 = vsel %vm74_vm4, %v69_v26, -inf  ;;  %v97_v28 = vsel %vm51_vm3, %v69_v26, 0.0 }
  0x91   :  { %76 = vmax.xlane.f32.xlu0 %v75_v27  ;;  %v101_v29 = vsel %vm74_vm4, %v97_v28, 0.0 }
  0x92   :  { %102 = vadd.xlane.f32.xlu1 %v101_v29 }
 0x118   :  { %v73_v30 = vpop.xlane.xlu1 %72 }
 0x119   :  { %v78_v31 = vsub.f32 %v68_v20, %v73_v30 }
 0x11b   :  { %v80_v34 = vmul.f32 1.442695, %v78_v31 }
 0x11e   :  { %v77_v32 = vpop.xlane.xlu0 %76 }
 0x11f   :  { %v79_v33 = vsub.f32 %v69_v26, %v77_v32  ;;  %v103_v48 = vpop.xlane.xlu1 %102 }
 0x121   :  { %v82_v35 = vmul.f32 1.442695, %v79_v33 }
 0x123   :  { %148 = vpow2.f32 %v82_v35 }
 0x124   :  { %150 = vpow2.f32 %v80_v34 }
 0x12d   :  { %v149_v36 = vpop.eup %148 }
 0x12e   :  { %v87_v37 = vsel %vm74_vm4, %v149_v36, 0.0  ;;  %v151_v38 = vpop.eup %150 }
 0x12f   :  { %88 = vadd.xlane.f32.xlu0 %v87_v37  ;;  %v84_v39 = vsel %vm70_vm2, %v151_v38, 0.0 }
 0x133   :  { %85 = vadd.xlane.f32.xlu0 %v84_v39 }
 0x137   :  { %99 = vadd.xlane.f32.xlu0 %v98_v41 }
 0x1bc   :  { %v89_v42 = vpop.xlane.xlu0 %88 }
 0x1bd   :  { %152 = vlog2.f32 %v89_v42 }
 0x1c0   :  { %v86_v43 = vpop.xlane.xlu0 %85 }
 0x1c1   :  { %154 = vlog2.f32 %v86_v43 }
 0x1c4   :  { %v100_v55 = vpop.xlane.xlu0 %99 }
 0x1c7   :  { %v153_v44 = vpop.eup %152 }
 0x1c8   :  { %v93_v45 = vmul.f32 0.6931472, %v153_v44 }
 0x1ca   :  { %v95_v46 = vadd.f32 %v93_v45, %v77_v32 }
 0x1cb   :  { %v155_v47 = vpop.eup %154 }
 0x1cc   :  { %v91_v51 = vmul.f32 0.6931472, %v155_v47  ;;  %v105_v52 = vsub.f32 %v95_v46, %v103_v48 }
 0x1ce   :  { %v94_v53 = vadd.f32 %v91_v51, %v73_v30  ;;  %v107_v54 = vmul.f32 %v140_v50, %v105_v52 }
 0x1d0   :  { %v104_v56 = vsub.f32 %v94_v53, %v100_v55  ;;  %v111_v58 = vsel %vm110_vm6, %v107_v54, 0.0 }
 0x1d2   :  { %v109_v57 = vsel %vm108_vm5, %v104_v56, 0.0 }
 0x1d3   :  { %v112_v59 = vadd.f32 %v111_v58, %v109_v57 }
 0x1d5   :  { %113 = vadd.xlane.f32.xlu1 %v112_v59 }
 0x262   :  { %v114_v60 = vpop.xlane.xlu1 %113 }
 0x263   :  { %v115_v61 = vrot.slane %v114_v60, 4 }
 0x265   :  { %v116_v62 = vadd.f32 %v115_v61, %v114_v60 }
 0x267   :  { %v117_v63 = vrot.slane %v116_v62, 2 }
 0x269   :  { %v118_v0 = vadd.f32 %v117_v63, %v116_v62 }
 0x26b   :  { %v119_v1 = vrot.slane %v118_v0, 1 }
 0x26d   :  { %v120_v2 = vadd.f32 %v119_v1, %v118_v0 }
 0x26f   :  { %141 = vpush %v120_v2 }
 0x2a0   :  { %s142_s23 = spop %141 }
 0x2a1   :  { %v122_v3 = vstv %s142_s23 }
 0x2a2   :  { %v123_v4 = vmul.f32 0.1, %v122_v3 }
 0x2a4   :  { %125 = vst.msk [vmem:[#allocation2] sm:$0x1] %vm124_vm7, %v123_v4 }
 0x2a5   :  { %167 = shalt.err (!%p164_p4)
}
 0x2a6   :  { %s168_s28 = scalar_lea.hbm %s248_s3, 16 }
 0x2a7   :  { %p169_p5 = scmp.ne.s32.totalorder %s248_s3, %s168_s28  ;;  %p172_p6 = scmp.lt.u32.totalorder %s168_s28, %s248_s3 }
 0x2a9   :  { %p174_p7 = pnand %p172_p6, %p169_p5 }
 0x2ab   :  { %177 = shalt.err (!%p174_p7)
}
 0x2ac   :  { %135 = dma.vmem_to_hbm [thread:$0]  %s133_s2, 16, %s248_s3, [#allocation3]  }
 0x2ad   :  { %178 = dma.done.wait [#allocation3], 16  }
 0x2ae   :  { %179 = vsyncadd [#allocation3], 4294967280 }
 0x2af   :  { %139 = vsyncpa [#allocation3], 1 }

</bundles_post_ra>
